<compile_context>
chip_gen: v7x
topology: tpu7x:2x2x1
jax: 0.10.0
libtpu: 0.0.40
codegen_flags: <defaults>
</compile_context>

<pallas_src>
import functools

import jax
import jax.numpy as jnp
from jax.experimental import pallas as pl
from jax.experimental.pallas import tpu as pltpu

_LANE = 128
_MAX_TILE_LANES = 8192                      # bounds in-kernel unroll, past BW knee
_POOL_BUDGET_BYTES = 24 * 1024 * 1024       # pool pass: 2 input buffers
_SCALE_BUDGET_BYTES = 24 * 1024 * 1024      # scale pass: 2 in + 2 out buffers
_FUSED_SLAB_BUDGET_BYTES = 40 * 1024 * 1024  # full fusion: 2 in + 2 out slabs + weights
_VMEM_LIMIT_BYTES = 48 * 1024 * 1024        # <= v7x 64 MiB VMEM per TC


# ---------------------------------------------------------------------------
# Kernels
# ---------------------------------------------------------------------------

def _fused_kernel(x_ref, w1_ref, b1_ref, w2_ref, b2_ref, o_ref, *, inv_hw):
    """Fully fused SE for one batch element (x slab VMEM-resident).

    x_ref/o_ref: (1, C, HW); w1: (Cr, C); b1: (Cr, 1); w2: (C, Cr); b2: (C, 1).
    """
    x = x_ref[0]                                                  # (C, HW)
    pooled = jnp.sum(x.astype(jnp.float32), axis=1, keepdims=True) * inv_hw  # (C, 1)
    h = jnp.dot(w1_ref[...], pooled.astype(w1_ref.dtype),
                preferred_element_type=jnp.float32) + b1_ref[...]            # (Cr, 1)
    h = jnp.maximum(h, 0.0)
    g = jnp.dot(w2_ref[...], h.astype(w2_ref.dtype),
                preferred_element_type=jnp.float32) + b2_ref[...]            # (C, 1)
    gate = jax.nn.sigmoid(g)                                                 # (C, 1)
    o_ref[0] = (x * gate.astype(x.dtype)).astype(o_ref.dtype)


def _pool_kernel(x_ref, pooled_ref, acc_ref, *, hw, inv_hw):
    """Squeeze pass: masked per-channel spatial mean.

    x_ref:      (1, C, tHW)  current spatial tile of one batch element
    pooled_ref: (1, C, 1)    written only on the last spatial tile
    acc_ref:    (C, 128)     f32 lane-group accumulator (VMEM scratch)
    """
    k = pl.program_id(1)
    nk = pl.num_programs(1)

    @pl.when(k == 0)
    def _():
        acc_ref[...] = jnp.zeros_like(acc_ref)

    x = x_ref[0].astype(jnp.float32)                              # (C, tHW)
    c, thw = x.shape
    # Mask OOB lanes of the (possibly ragged) last tile: Pallas OOB input
    # reads are garbage, not zeros.
    lane = jax.lax.broadcasted_iota(jnp.int32, (c, thw), 1)
    x = jnp.where(k * thw + lane < hw, x, 0.0)
    # Lane-aligned VPU adds into the (C, 128) accumulator; the single
    # cross-lane XLU reduce happens only once, on the final step.
    for g in range(thw // _LANE):
        acc_ref[...] += x[:, g * _LANE:(g + 1) * _LANE]

    @pl.when(k == nk - 1)
    def _():
        pooled_ref[0] = jnp.sum(acc_ref[...], axis=1, keepdims=True) * inv_hw


def _excite_scale_kernel(p_ref, w1_ref, b1_ref, w2_ref, b2_ref, x_ref, o_ref):
    """Fused excitation + streaming scale.

    The excitation mat-vecs are tiny and recomputed every tile (hidden under
    DMA), which lets both grid axes stay fully parallel.
    p_ref: (1, C, 1) pooled mean; x_ref/o_ref: (1, C, tHW).
    """
    p = p_ref[0]                                                  # (C, 1) f32
    h = jnp.dot(w1_ref[...], p.astype(w1_ref.dtype),
                preferred_element_type=jnp.float32) + b1_ref[...]            # (Cr, 1)
    h = jnp.maximum(h, 0.0)
    g = jnp.dot(w2_ref[...], h.astype(w2_ref.dtype),
                preferred_element_type=jnp.float32) + b2_ref[...]            # (C, 1)
    gate = jax.nn.sigmoid(g)                                                 # (C, 1)
    x = x_ref[0]                                                             # (C, tHW)
    o_ref[0] = (x * gate.astype(x.dtype)).astype(o_ref.dtype)


# ---------------------------------------------------------------------------
# Wrapper
# ---------------------------------------------------------------------------

def _lane_tile(hw, per_lane_bytes, budget_bytes, max_thw=None):
    """Largest multiple-of-128 spatial tile within a VMEM byte budget."""
    t = (budget_bytes // max(per_lane_bytes, 1)) // _LANE * _LANE
    full = max(_LANE, (hw // _LANE) * _LANE)
    t = max(_LANE, min(t, full, _MAX_TILE_LANES))
    if max_thw is not None:
        t = min(t, max(_LANE, (max_thw // _LANE) * _LANE))
    return int(t)


def se_module(x, fc1_w, fc2_w,
              bn1_gamma, bn1_beta, bn1_mean, bn1_var,
              bn2_gamma, bn2_beta, bn2_mean, bn2_var,
              *, eps=1e-5, force_two_pass=False, max_thw=None):
    """SE forward.  x: (B, C, H, W); fc1_w: (Cr, C); fc2_w: (C, Cr)."""
    B, C, H, W = x.shape
    Cr = fc1_w.shape[0]
    HW = H * W
    itemsize = x.dtype.itemsize

    # Fold inference-mode BatchNorm into the 1x1-conv weight rows; keep the
    # shifts as (·, 1) bias columns.  Weights stay in the activation dtype.
    s1 = bn1_gamma / jnp.sqrt(bn1_var + eps)                      # (Cr,)
    s2 = bn2_gamma / jnp.sqrt(bn2_var + eps)                      # (C,)
    w1 = (fc1_w * s1[:, None]).astype(x.dtype)                    # (Cr, C)
    w2 = (fc2_w * s2[:, None]).astype(x.dtype)                    # (C, Cr)
    b1 = (bn1_beta - bn1_mean * s1).astype(jnp.float32).reshape(Cr, 1)
    b2 = (bn2_beta - bn2_mean * s2).astype(jnp.float32).reshape(C, 1)

    x3 = x.reshape(B, C, HW)
    weight_bytes = (w1.size + w2.size) * x.dtype.itemsize + (b1.size + b2.size) * 4
    slab_bytes = 4 * C * HW * itemsize + 2 * weight_bytes
    use_fused = (HW < _LANE) or (not force_two_pass
                                 and slab_bytes <= _FUSED_SLAB_BUDGET_BYTES)

    if use_fused:
        # --- single pass: x read from HBM exactly once -----------------------
        out3 = pl.pallas_call(
            functools.partial(_fused_kernel, inv_hw=1.0 / HW),
            out_shape=jax.ShapeDtypeStruct((B, C, HW), x.dtype),
            grid_spec=pltpu.PrefetchScalarGridSpec(
                num_scalar_prefetch=0,
                grid=(B,),
                in_specs=[
                    pl.BlockSpec((1, C, HW), lambda b: (b, 0, 0)),
                    pl.BlockSpec((Cr, C), lambda b: (0, 0)),
                    pl.BlockSpec((Cr, 1), lambda b: (0, 0)),
                    pl.BlockSpec((C, Cr), lambda b: (0, 0)),
                    pl.BlockSpec((C, 1), lambda b: (0, 0)),
                ],
                out_specs=pl.BlockSpec((1, C, HW), lambda b: (b, 0, 0)),
            ),
            compiler_params=pltpu.CompilerParams(
                dimension_semantics=("parallel",),
                vmem_limit_bytes=_VMEM_LIMIT_BYTES),
        )(x3, w1, b1, w2, b2)
        return out3.reshape(B, C, H, W)

    # --- pass 1: global average pool (squeeze) -> (B, C, 1) ------------------
    thw_p = _lane_tile(HW, 2 * C * itemsize, _POOL_BUDGET_BYTES, max_thw)
    n_p = pl.cdiv(HW, thw_p)
    pooled = pl.pallas_call(
        functools.partial(_pool_kernel, hw=HW, inv_hw=1.0 / HW),
        out_shape=jax.ShapeDtypeStruct((B, C, 1), jnp.float32),
        grid_spec=pltpu.PrefetchScalarGridSpec(
            num_scalar_prefetch=0,
            grid=(B, n_p),
            in_specs=[pl.BlockSpec((1, C, thw_p), lambda b, k: (b, 0, k))],
            out_specs=pl.BlockSpec((1, C, 1), lambda b, k: (b, 0, 0)),
            scratch_shapes=[pltpu.VMEM((C, _LANE), jnp.float32)],
        ),
        compiler_params=pltpu.CompilerParams(
            dimension_semantics=("parallel", "arbitrary"),
            vmem_limit_bytes=_VMEM_LIMIT_BYTES),
    )(x3)

    # --- pass 2: fused excitation + streaming scale ---------------------------
    thw_s = _lane_tile(HW, 4 * C * itemsize, _SCALE_BUDGET_BYTES, max_thw)
    n_s = pl.cdiv(HW, thw_s)
    out3 = pl.pallas_call(
        _excite_scale_kernel,
        out_shape=jax.ShapeDtypeStruct((B, C, HW), x.dtype),
        grid_spec=pltpu.PrefetchScalarGridSpec(
            num_scalar_prefetch=0,
            grid=(B, n_s),
            in_specs=[
                pl.BlockSpec((1, C, 1), lambda b, k: (b, 0, 0)),
                pl.BlockSpec((Cr, C), lambda b, k: (0, 0)),
                pl.BlockSpec((Cr, 1), lambda b, k: (0, 0)),
                pl.BlockSpec((C, Cr), lambda b, k: (0, 0)),
                pl.BlockSpec((C, 1), lambda b, k: (0, 0)),
                pl.BlockSpec((1, C, thw_s), lambda b, k: (b, 0, k)),
            ],
            out_specs=pl.BlockSpec((1, C, thw_s), lambda b, k: (b, 0, k)),
        ),
        compiler_params=pltpu.CompilerParams(
            dimension_semantics=("parallel", "parallel"),
            vmem_limit_bytes=_VMEM_LIMIT_BYTES),
    )(pooled, w1, b1, w2, b2, x3)

    return out3.reshape(B, C, H, W)


# ---------------------------------------------------------------------------
# Reference + test
# ---------------------------------------------------------------------------

def reference(x, fc1_w, fc2_w, g1, be1, m1, v1, g2, be2, m2, v2, eps=1e-5):
    pooled = jnp.mean(x, axis=(2, 3))                             # (B, C)
    h = pooled @ fc1_w.T                                          # (B, Cr)
    h = (h - m1) / jnp.sqrt(v1 + eps) * g1 + be1
    h = jnp.maximum(h, 0.0)
    g = h @ fc2_w.T                                               # (B, C)
    g = (g - m2) / jnp.sqrt(v2 + eps) * g2 + be2
    g = jax.nn.sigmoid(g)
    return x * g[:, :, None, None]


def _make_params(key, C, Cr):
    ks = jax.random.split(key, 10)
    fc1_w = jax.random.normal(ks[0], (Cr, C), dtype=jnp.float32) * 0.1
    fc2_w = jax.random.normal(ks[1], (C, Cr), dtype=jnp.float32) * 0.1
    g1 = 1.0 + 0.1 * jax.random.normal(ks[2], (Cr,), dtype=jnp.float32)
    be1 = 0.1 * jax.random.normal(ks[3], (Cr,), dtype=jnp.float32)
    m1 = 0.1 * jax.random.normal(ks[4], (Cr,), dtype=jnp.float32)
    v1 = jnp.abs(jax.random.normal(ks[5], (Cr,), dtype=jnp.float32)) + 0.5
    g2 = 1.0 + 0.1 * jax.random.normal(ks[6], (C,), dtype=jnp.float32)
    be2 = 0.1 * jax.random.normal(ks[7], (C,), dtype=jnp.float32)
    m2 = 0.1 * jax.random.normal(ks[8], (C,), dtype=jnp.float32)
    v2 = jnp.abs(jax.random.normal(ks[9], (C,), dtype=jnp.float32)) + 0.5
    return fc1_w, fc2_w, g1, be1, m1, v1, g2, be2, m2, v2


def _run_case(key, B, C, H, W, reduction, force_two_pass=False, max_thw=None):
    kx, kp = jax.random.split(key)
    Cr = C // reduction
    x = jax.random.normal(kx, (B, C, H, W), dtype=jnp.float32)
    params = _make_params(kp, C, Cr)

    out = se_module(x, *params, force_two_pass=force_two_pass, max_thw=max_thw)
    out = jax.block_until_ready(out)

    ref = reference(x, *params)
    assert out.shape == (B, C, H, W)
    err = float(jnp.max(jnp.abs(out - ref)))
    assert jnp.allclose(out, ref, atol=1e-5, rtol=1e-5), f"mismatch vs ref: {err}"


if __name__ == "__main__":
    key = jax.random.PRNGKey(0)
    k1, k2 = jax.random.split(key)
    # Fully fused single-pass path (per-batch slab fits VMEM, HW=64 < 128).
    _run_case(k1, B=2, C=16, H=8, W=8, reduction=4)
    # Two-pass path with a ragged last spatial tile (HW=144, tile=128):
    # exercises the in-kernel OOB-lane mask and the fused excite+scale pass.
    _run_case(k2, B=2, C=32, H=12, W=12, reduction=4,
              force_two_pass=True, max_thw=128)
    print("KERNEL_OK")
</pallas_src>

<mosaic_0001>
module attributes {stable_mosaic.version = 11 : i64} {
  func.func @_fused_kernel(%arg0: i32, %arg1: memref<1x16x64xf32, #tpu.memory_space<vmem>>, %arg2: memref<4x16xf32, #tpu.memory_space<vmem>>, %arg3: memref<4x1xf32, #tpu.memory_space<vmem>>, %arg4: memref<16x4xf32, #tpu.memory_space<vmem>>, %arg5: memref<16x1xf32, #tpu.memory_space<vmem>>, %arg6: memref<1x16x64xf32, #tpu.memory_space<vmem>>) attributes {dimension_semantics = [#tpu.dimension_semantics<parallel>], iteration_bounds = array<i64: 2>, scalar_prefetch = 0 : i64, scratch_operands = 0 : i64, tpu.core_type = #tpu.core_type<tc>, window_params = [{transform_indices = @transform_0, window_bounds = array<i64: 1, 16, 64>}, {pipeline_mode = #tpu.pipeline_mode<synchronous>, transform_indices = @transform_1, window_bounds = array<i64: 4, 16>}, {pipeline_mode = #tpu.pipeline_mode<synchronous>, transform_indices = @transform_2, window_bounds = array<i64: 4, 1>}, {pipeline_mode = #tpu.pipeline_mode<synchronous>, transform_indices = @transform_3, window_bounds = array<i64: 16, 4>}, {pipeline_mode = #tpu.pipeline_mode<synchronous>, transform_indices = @transform_4, window_bounds = array<i64: 16, 1>}, {transform_indices = @transform_5, window_bounds = array<i64: 1, 16, 64>}]} {
    %c0 = arith.constant 0 : index
    %c0_0 = arith.constant 0 : index
    %c0_1 = arith.constant 0 : index
    %0 = vector.load %arg1[%c0, %c0_0, %c0_1] : memref<1x16x64xf32, #tpu.memory_space<vmem>>, vector<1x16x64xf32>
    %1 = vector.shape_cast %0 : vector<1x16x64xf32> to vector<16x64xf32>
    %cst = arith.constant dense<0.000000e+00> : vector<16xf32>
    %2 = vector.multi_reduction <add>, %1, %cst [1] : vector<16x64xf32> to vector<16xf32>
    %3 = vector.shape_cast %2 : vector<16xf32> to vector<16x1xf32>
    %cst_2 = arith.constant 1.562500e-02 : f32
    %4 = vector.broadcast %cst_2 : f32 to vector<16x1xf32>
    %5 = arith.mulf %3, %4 : vector<16x1xf32>
    %c0_3 = arith.constant 0 : index
    %c0_4 = arith.constant 0 : index
    %6 = vector.load %arg2[%c0_3, %c0_4] : memref<4x16xf32, #tpu.memory_space<vmem>>, vector<4x16xf32>
    %cst_5 = arith.constant dense<0.000000e+00> : vector<4x1xf32>
    %7 = tpu.matmul %6, %5, %cst_5 {dimension_numbers = #tpu.dot_dimension_numbers<[1], [0], [0], [1], [0, 0, 1, 1], [], []>} : vector<4x16xf32>, vector<16x1xf32>, vector<4x1xf32> -> vector<4x1xf32>
    %c0_6 = arith.constant 0 : index
    %c0_7 = arith.constant 0 : index
    %8 = vector.load %arg3[%c0_6, %c0_7] : memref<4x1xf32, #tpu.memory_space<vmem>>, vector<4x1xf32>
    %9 = arith.addf %7, %8 : vector<4x1xf32>
    %cst_8 = arith.constant 0.000000e+00 : f32
    %10 = vector.broadcast %cst_8 : f32 to vector<4x1xf32>
    %11 = arith.maximumf %9, %10 : vector<4x1xf32>
    %c0_9 = arith.constant 0 : index
    %c0_10 = arith.constant 0 : index
    %12 = vector.load %arg4[%c0_9, %c0_10] : memref<16x4xf32, #tpu.memory_space<vmem>>, vector<16x4xf32>
    %cst_11 = arith.constant dense<0.000000e+00> : vector<16x1xf32>
    %13 = tpu.matmul %12, %11, %cst_11 {dimension_numbers = #tpu.dot_dimension_numbers<[1], [0], [0], [1], [0, 0, 1, 1], [], []>} : vector<16x4xf32>, vector<4x1xf32>, vector<16x1xf32> -> vector<16x1xf32>
    %c0_12 = arith.constant 0 : index
    %c0_13 = arith.constant 0 : index
    %14 = vector.load %arg5[%c0_12, %c0_13] : memref<16x1xf32, #tpu.memory_space<vmem>>, vector<16x1xf32>
    %15 = arith.addf %13, %14 : vector<16x1xf32>
    %16 = arith.negf %15 : vector<16x1xf32>
    %17 = math.exp %16 : vector<16x1xf32>
    %cst_14 = arith.constant 1.000000e+00 : f32
    %18 = vector.broadcast %cst_14 : f32 to vector<16x1xf32>
    %19 = arith.addf %18, %17 : vector<16x1xf32>
    %20 = arith.divf %18, %19 : vector<16x1xf32>
    %21 = vector.broadcast %20 : vector<16x1xf32> to vector<16x64xf32>
    %22 = arith.mulf %1, %21 : vector<16x64xf32>
    %c0_15 = arith.constant 0 : index
    %c0_16 = arith.constant 0 : index
    %c0_17 = arith.constant 0 : index
    %23 = vector.load %arg6[%c0_15, %c0_16, %c0_17] : memref<1x16x64xf32, #tpu.memory_space<vmem>>, vector<1x16x64xf32>
    %24 = vector.shape_cast %23 : vector<1x16x64xf32> to vector<16x64xf32>
    %25 = vector.shape_cast %22 : vector<16x64xf32> to vector<1x16x64xf32>
    tpu.vector_store %arg6[%c0_15, %c0_16, %c0_17], %25 {strides = array<i32>} : memref<1x16x64xf32, #tpu.memory_space<vmem>>, vector<1x16x64xf32>,
    return
  }
  func.func @transform_0(%arg0: i32) -> (i32, i32, i32) {
    %c0_i32 = arith.constant 0 : i32
    %c0_i32_0 = arith.constant 0 : i32
    %c0_i32_1 = arith.constant 0 : i32
    return %arg0, %c0_i32, %c0_i32_0 : i32, i32, i32
  }
  func.func @transform_1(%arg0: i32) -> (i32, i32) {
    %c0_i32 = arith.constant 0 : i32
    %c0_i32_0 = arith.constant 0 : i32
    %c0_i32_1 = arith.constant 0 : i32
    return %c0_i32, %c0_i32_0 : i32, i32
  }
  func.func @transform_2(%arg0: i32) -> (i32, i32) {
    %c0_i32 = arith.constant 0 : i32
    %c0_i32_0 = arith.constant 0 : i32
    %c0_i32_1 = arith.constant 0 : i32
    return %c0_i32, %c0_i32_0 : i32, i32
  }
  func.func @transform_3(%arg0: i32) -> (i32, i32) {
    %c0_i32 = arith.constant 0 : i32
    %c0_i32_0 = arith.constant 0 : i32
    %c0_i32_1 = arith.constant 0 : i32
    return %c0_i32, %c0_i32_0 : i32, i32
  }
  func.func @transform_4(%arg0: i32) -> (i32, i32) {
    %c0_i32 = arith.constant 0 : i32
    %c0_i32_0 = arith.constant 0 : i32
    %c0_i32_1 = arith.constant 0 : i32
    return %c0_i32, %c0_i32_0 : i32, i32
  }
  func.func @transform_5(%arg0: i32) -> (i32, i32, i32) {
    %c0_i32 = arith.constant 0 : i32
    %c0_i32_0 = arith.constant 0 : i32
    %c0_i32_1 = arith.constant 0 : i32
    return %arg0, %c0_i32, %c0_i32_0 : i32, i32, i32
  }
}

</mosaic_0001>

<bundles_post_ra>
// kernel: tpu_custom_call.1
= control target key start
LH: loop header
LB: loop body
LE: loop exit
PB: predicated region body
PF: predicated region fallthrough
CT: control target
= control target key end

     0   :  { %10 = vsyncpa [#allocation3], 0  ;;  %s829_s0 = inlined_call_operand.vmem [shape: f32[2,16,64], index: 0, kind: input, shape index: {}]   ;;  %s830_s1 = inlined_call_operand.vmem [shape: f32[4,16], index: 1, kind: input, shape index: {}]   ;;  %s831_s2 = inlined_call_operand.vmem [shape: f32[4,1], index: 2, kind: input, shape index: {}]   ;;  %s832_s3 = inlined_call_operand.vmem [shape: f32[16,4], index: 3, kind: input, shape index: {}]   ;;  %s833_s4 = inlined_call_operand.vmem [shape: f32[16,1], index: 4, kind: input, shape index: {}]   ;;  %s834_s5 = inlined_call_operand.hbm [shape: f32[2,16,64], index: 5, kind: output, shape index: {}]  }
   0x1   :  { %12 = vsyncpa [#allocation3 + $0x1], 0  ;;  %s700_s18 = smov 0   ;;  %s702_s19 = smov 0  }
   0x2   :  { %s704_s20 = smov 0   ;;  %s706_s21 = smov 0  }
   0x3 LB: > { %s721_s22 = sadd.s32 4294967295, %s661_s21   ;;  %s503_s23 = sadd.s32 4294967294, %s661_s21   ;;  %s661_s21 = sphi %s706_s21, %s840_s21   ;;  %s657_s20 = sphi %s704_s20, %s839_s20   ;;  %s653_s19 = sphi %s702_s19, %s838_s19   ;;  %s649_s18 = sphi %s700_s18, %s837_s18  }
   0x4   : > { %s725_s24 = sadd.s32 1, %s661_s21   ;;  %s135_s25 = sadd.s32 1, %s657_s20 }
   0x5   : > { %s132_s26 = ssub.s32 %s661_s21, %s725_s24  ;;  %p145_p0 = scmp.ne.s32.totalorder %s657_s20, %s653_s19 }
   0x6   : > { %p133_p1 = scmp.eq.s32.totalorder %s132_s26, 0  ;;  %p146_p2 = scmp.eq.s32.totalorder %s721_s22, 1 }
   0x7   : > { %p151_p3 = scmp.ne.s32.totalorder %s653_s19, %s649_s18  ;;  %p152_p4 = scmp.eq.s32.totalorder %s503_s23, 1 }
   0x8   : > { %s736_s27 = scalar_select %p133_p1, %s657_s20, %s135_s25  }
   0x9   : > { %p738_p5 = por %p146_p2, %p145_p0  ;;  %p742_p6 = por %p152_p4, %p151_p3 }
   0xa   : > { %p506_p7 = scmp.ge.s32.totalorder %s661_s21, 1  ;;  %p190_p8 = scmp.lt.s32.totalorder %s661_s21, 3 }
   0xc   : > { %p191_p9 = pnand %p506_p7, %p190_p8 }
   0xd   : > { %p218_p10 = scmp.lt.s32.totalorder (!%p191_p9), %s721_s22, 1  ;;  %vm225_vm0 = vcmask (!%p191_p9), 523264   ;;  %v663_v4 = vmov (!%p191_p9), 0.0|0.0   ;;  %vm664_vm1 = vmmov (!%p191_p9), 0   ;;  %v665_v5 = vmov (!%p191_p9), 0.0   ;;  %v311_v12 = vld [vmem:[%s832_s3] sm:$0xff] (!%p191_p9) }
   0xe   : > { %194 = sbr.rel (%p191_p9) target bundleno = 788 (0x314), region = 40  ;;  %541 = vmatprep.subr.bf16.mxu0 (!%p191_p9), %v663_v4  ;;  %533 = vmatprep.mubr.msk.f32.mxu0 (!%p191_p9), %vm664_vm1, %v665_v5  ;;  %v234_v11 = vld [vmem:[%s830_s1] sm:$0xf] (!%p191_p9)  ;;  %vm236_vm2 = vcmask (!%p191_p9), 130048   ;;  %vm315_vm3 = vcmask (!%p191_p9), 31744   ;;  %vm322_vm4 = vcmask (!%p191_p9), 1043456  }
   0xf   : > { %538 = vmatprep.mubr.msk.f32.mxu1 (!%p191_p9), %vm315_vm3, %v311_v12  ;;  %v235_v13 = vld [vmem:[%s831_s2] sm:$0xf] (!%p191_p9)  ;;  %v312_v18 = vld [vmem:[%s832_s3 + $0x8] sm:$0xff] (!%p191_p9)  ;;  %v666_v19 = vmov (!%p191_p9), 0   ;;  %s522_s10 = sshll.u32 (!%p191_p9), %s721_s22, 8  ;;  %s667_s15 = smov (!%p191_p9), [#allocation2]  }
  0x10   : > { %589 = vset.pattern.permute.xlu1 (!%p191_p9), %v666_v19  ;;  %590 = vset.pattern.permute.xlu0 (!%p191_p9), %v666_v19  ;;  %v314_v20 = vld [vmem:[%s833_s4 + $0x8] sm:$0xff] (!%p191_p9)  ;;  %v313_v21 = vld [vmem:[%s833_s4] sm:$0xff] (!%p191_p9)  ;;  %s784_s13 = scalar_lea.hbm (!%p191_p9), %s834_s5, %s522_s10  ;;  %s603_s16 = sshll.u32 (!%p191_p9), %s667_s15, 4  ;;  %s604_s16 = int_to_ptr.vmem [resolvable:$false] %s603_s16 }
  0x11   : > { %s605_s17 = scalar_lea.vmem (!%p191_p9), %s604_s16, 512 }
  0x15   : > { %s219_s30 = scalar_select %p218_p10, %s721_s22, 1 }
  0x17   : > { %s521_s6 = sshll.u32 %s219_s30, 4 }
  0x18   : > { %s222_s9 = scalar_lea.vmem %s829_s0, %s521_s6  ;;  %s215_s6 = sand.u32 1, %s653_s19  }
  0x19   : > { %v223_v0 = vld [vmem:[%s222_s9] sm:$0xff]  ;;  %v753_v1 = vld [vmem:[%s222_s9 + $0x8] sm:$0xff]  ;;  %s507_s7 = sshll.u32 %s215_s6, 4  ;;  %s788_s14 = scalar_lea.sflag [#allocation3], %s215_s6 }
  0x1a   : > { %v226_v2 = vsel %vm225_vm0, %v223_v0, 0.0  ;;  %v229_v3 = vsel %vm225_vm0, %v753_v1, 0.0  ;;  %s217_s8 = scalar_lea.vmem [#allocation2], %s507_s7 }
  0x1b   : > { %227 = vadd.xlane.f32.xlu0 %v226_v2  ;;  %s441_s9 = sshll.u32 %s217_s8, 4  ;;  %s779_s9 = int_to_ptr.vmem [resolvable:$true] %s441_s9 }
  0x1c   : > { %s599_s22 = scalar_lea.vmem %s779_s9, 256  ;;  %p606_p0 = scmp.lt.s32.totalorder %s779_s9, %s604_s16 }
  0x1d   : > { %p600_p11 = scmp.ne.s32.totalorder %s779_s9, %s599_s22  ;;  %p607_p1 = scmp.lt.s32.totalorder %s605_s17, %s599_s22 }
  0x1f   : > { %230 = vadd.xlane.f32.xlu0 %v229_v3  ;;  %p601_p12 = pnand %p600_p11, %p738_p5  ;;  %p608_p2 = por %p607_p1, %p606_p0 }
  0x21   : > { %p602_p13 = pneg %p601_p12 }
  0x23   : > { %p609_p3 = pnand %p608_p2, %p602_p13 }
  0xa8   : > { %v228_v6 = vpop.xlane.xlu0 %227 }
  0xa9   : > { %v232_v8 = vmul.f32 0.015625, %v228_v6 }
  0xac   : > { %v231_v7 = vpop.xlane.xlu0 %230 }
  0xad   : > { %v233_v9 = vmul.f32 0.015625, %v231_v7 }
  0xaf   : > { %v542_v10 = vpack.c.bf16 %v233_v9, %v232_v8 }
  0xb1   : > { %543 = vmatpush3.bf16.msra.mxu0 %v542_v10 }
  0xb4   : > { %534 = vmatmul.mubr.msk.f32.vlgmr.msra.gmra.mrb[0].mxu0 %vm236_vm2, %v234_v11 }
 0x187   : > { %v306_v14 = vpop.f32.mrb[0].mxu0 }
 0x188   : > { %v307_v15 = vadd.f32 %v306_v14, %v235_v13  ;;  %v535_v16 = vpop.f32.mrb[1].mxu0 }
 0x18a   : > { %v310_v17 = vmax.f32 %v307_v15, 0.0 }
 0x18c   : > { %536 = vmatprep.subr.msk.mxu1 %vm322_vm4, %v310_v17 }
 0x18d   : > { %537 = vmatpush3.msk.msra.mxu1 %vm322_vm4, %v310_v17 }
 0x18e   : > { %539 = vmatmul.mubr.msk.f32.vlgmr.msra.gmra.mrb[0].mxu1 %vm315_vm3, %v312_v18 }
 0x261   : > { %v540_v22 = vpop.f32.mrb[0].mxu1 }
 0x262   : > { %v398_v23 = vadd.f32 %v540_v22, %v314_v20  ;;  %v392_v24 = vpop.f32.mrb[1].mxu1 }
 0x263   : > { %v393_v25 = vadd.f32 %v392_v24, %v313_v21 }
 0x264   : > { %v515_v26 = vmul.f32 -1.442695, %v398_v23 }
 0x265   : > { %v514_v27 = vmul.f32 -1.442695, %v393_v25 }
 0x266   : > { %591 = vpow2.f32 %v515_v26 }
 0x267   : > { %593 = vpow2.f32 %v514_v27 }
 0x270   : > { %v592_v28 = vpop.eup %591 }
 0x271   : > { %v594_v29 = vpop.eup %593  ;;  %v408_v31 = vadd.f32 1.0, %v592_v28 }
 0x272   : > { %v407_v30 = vadd.f32 1.0, %v594_v29 }
 0x274   : > { %595 = vrcp.f32 %v407_v30 }
 0x275   : > { %597 = vrcp.f32 %v408_v31 }
 0x27e   : > { %v596_v32 = vpop.eup %595 }
 0x27f   : > { %415 = vperm.xlu1 %589, %v596_v32   ;;  %v598_v33 = vpop.eup %597 }
 0x283   : > { %420 = vperm.xlu1 %589, %v598_v33  }
 0x2fe   : > { %v416_v34 = vpop.permute.xlu1 %415 }
 0x2ff   : > { %v423_v35 = vmul.f32 %v416_v34, %v223_v0 }
 0x301   : > { %425 = vst.msk [vmem:[%s217_s8] sm:$0xff] %vm225_vm0, %v423_v35 }
 0x302   : > { %v421_v36 = vpop.permute.xlu1 %420 }
 0x303   : > { %v424_v37 = vmul.f32 %v421_v36, %v753_v1 }
 0x305   : > { %426 = vst.msk [vmem:[%s217_s8 + $0x8] sm:$0xff] %vm225_vm0, %v424_v37 }
 0x306   : > { %612 = shalt.err (!%p609_p3)
}
 0x307   : > { %s613_s23 = scalar_lea.hbm %s784_s13, 256  ;;  %s617_s30 = scalar_lea.hbm %s834_s5, 512 }
 0x308   : > { %p614_p4 = scmp.ne.s32.totalorder %s784_s13, %s613_s23  ;;  %p618_p9 = scmp.lt.u32.totalorder %s784_s13, %s834_s5 }
 0x309   : > { %p619_p10 = scmp.lt.u32.totalorder %s617_s30, %s613_s23  ;;  %p621_p12 = scmp.lt.u32.totalorder %s613_s23, %s784_s13 }
 0x30a   : > { %p615_p7 = pnand %p614_p4, %p738_p5 }
 0x30b   : > { %p620_p11 = por %p619_p10, %p618_p9 }
 0x30c   : > { %p616_p8 = pneg %p615_p7 }
 0x30d   : > { %p622_p13 = por %p621_p12, %p620_p11 }
 0x30f   : > { %p623_p0 = pnand %p622_p13, %p616_p8 }
 0x311   : > { %626 = shalt.err (!%p623_p0)
}
 0x312   : > { %s668_s8 = smov 128   ;;  %s669_s10 = smov 8  }
 0x313   : > { %544 = dma.vmem_to_hbm [thread:$0]  (%p738_p5), %s779_s9, 256, %s784_s13, %s788_s14, %s668_s8, %s668_s8, %s669_s10  }
 0x314 PF: > { %p550_p1 = scmp.ge.s32.totalorder %s661_s21, 2  ;;  %s456_s11 = sand.u32 1, %s649_s18  }
 0x315   : > { %s457_s12 = scalar_lea.sflag [#allocation3], %s456_s11 }
 0x316   : > { %p547_p2 = pnand %p550_p1, %p742_p6 }
 0x318   : > { %644 = dma.done.wait (!%p547_p2), %s457_s12, 256  }
 0x319   : > { %646 = vsyncadd (!%p547_p2), %s457_s12, 4294967040  ;;  %p15_p3 = scmp.ge.s32.totalorder %s725_s24, 4   ;;  %s837_s18 = smov %s653_s19 }
 0x31a   : > { %s838_s19 = smov %s657_s20  ;;  %s839_s20 = smov %s736_s27 }
 0x31b   : > { %s840_s21 = smov %s725_s24  ;;  %17 = sbr.rel (!%p15_p3) target bundleno = 3 (0x3), region = 75 }
 0x322   :  { %462 = vsyncpa [#allocation3], 1 }
 0x323   :  { %464 = vsyncpa [#allocation3 + $0x1], 1 }

</bundles_post_ra>
